<compile_context>
chip_gen: v5e
topology: v5e:2x2
jax: 0.10.0
libtpu: 0.0.40
codegen_flags: <defaults>
</compile_context>

<pallas_src>
from functools import partial

import jax
import jax.numpy as jnp
from jax.experimental import pallas as pl
from jax.experimental.pallas import tpu as pltpu


# Keep the scoped VMEM request comfortably under v7x's 64 MiB physical VMEM
# (also fine on v5e/v6e which have 128 MiB).
_VMEM_LIMIT_BYTES = 48 * 1024 * 1024
_LOG2E = 1.4426950408889634

_TM_PREF = 256      # row tile for the projection GEMMs
_TQ_PREF = 256      # query tile for the attention core


def _round_up(v, m):
    return ((v + m - 1) // m) * m


def _row_tile(m, pref=_TM_PREF):
    """Row tile for the streamed bf16 activation (multiple of 16 for sublane
    packing).  Awkward M is handled by padding rows up to a tile multiple in
    the wrapper, never by a full-extent fallback."""
    if m <= pref:
        return _round_up(m, 16)
    return pref


def _divisor_tile(dim, pref, align):
    """Largest divisor of dim <= pref that is a multiple of align; falls back
    to the full extent (always a legal block shape)."""
    if dim <= pref:
        return dim
    for t in range(pref, align - 1, -1):
        if dim % t == 0 and t % align == 0:
            return t
    return dim


# ----------------------------- Pallas kernels ------------------------------

def _qkv_matmul_kernel(x_ref, wq_ref, wk_ref, wv_ref, q_ref, k_ref, v_ref):
    """Fused qkv projection.  Weights are VMEM-resident (constant block index
    -> DMA'd once); the full contraction dim is a single block, so there is no
    k-loop and no accumulator scratch."""
    x = x_ref[...]                                   # (tm, C) bf16
    q_ref[...] = jnp.dot(x, wq_ref[...],
                         preferred_element_type=jnp.float32).astype(q_ref.dtype)
    k_ref[...] = jnp.dot(x, wk_ref[...],
                         preferred_element_type=jnp.float32).astype(k_ref.dtype)
    v_ref[...] = jnp.dot(x, wv_ref[...],
                         preferred_element_type=jnp.float32).astype(v_ref.dtype)


def _linear_bias_kernel(x_ref, w_ref, b_ref, o_ref):
    """y = x @ w + b with a VMEM-resident weight (single contraction block)."""
    o_ref[...] = (jnp.dot(x_ref[...], w_ref[...],
                          preferred_element_type=jnp.float32)
                  + b_ref[...]).astype(o_ref.dtype)


def _attn_core_kernel(q_ref, k_ref, v_ref, o_ref, o_scratch,
                      *, num_heads, head_dim):
    """Attention for all heads of one (batch, q-tile) block.

    q/k/v refs are (1, tq|N, C) bf16 with head h occupying columns
    [h*Dh, (h+1)*Dh).  scale * log2(e) is already folded into q (via W_q), so
    exp2 gives the exact softmax numerator.  Each head's normalized output is
    written into an f32 VMEM scratch (bounds live ranges, no concat), then the
    merged-head (tq, C) tile is stored once, lane-dense."""
    q = q_ref[0]                                     # (tq, C) bf16
    k = k_ref[0]                                     # (N,  C) bf16
    v = v_ref[0]

    for h in range(num_heads):                       # static unroll over heads
        lo = h * head_dim
        hi = lo + head_dim
        qh = q[:, lo:hi]                             # (tq, Dh)
        kh = k[:, lo:hi]                             # (N,  Dh)
        vh = v[:, lo:hi]

        # scores = q_h @ k_h^T on the MXU (bf16 in, f32 out); already scaled
        # and in log2 space because scale*log2e was folded into W_q.
        s = jax.lax.dot_general(qh, kh, (((1,), (1,)), ((), ())),
                                preferred_element_type=jnp.float32)  # (tq, N)
        s = s - jnp.max(s, axis=-1, keepdims=True)
        p = jnp.exp2(s)                                              # EUP
        inv = pl.reciprocal(jnp.sum(p, axis=-1, keepdims=True), approx=True)

        o_h = jnp.dot(p.astype(vh.dtype), vh,
                      preferred_element_type=jnp.float32)            # (tq, Dh)
        # Deferred normalization: N*Dh multiplies instead of N*N.
        o_scratch[:, lo:hi] = o_h * inv

    o_ref[0] = o_scratch[...].astype(o_ref.dtype)    # single lane-dense store


# ------------------------------ wrappers ------------------------------------

def _qkv_projection(x2d, wq, wk, wv, out_dtype=jnp.bfloat16):
    """q, k, v = x2d @ [wq, wk, wv] as three separate (M, C) bf16 arrays."""
    M, K = x2d.shape
    C = wq.shape[1]
    tm = _row_tile(M)
    Mp = _round_up(M, tm)
    if Mp != M:
        x2d = jnp.pad(x2d, ((0, Mp - M), (0, 0)))
    grid = (Mp // tm,)

    spec_x = pl.BlockSpec((tm, K), lambda i: (i, 0))
    spec_w = pl.BlockSpec((K, C), lambda i: (0, 0))      # resident weight
    spec_o = pl.BlockSpec((tm, C), lambda i: (i, 0))

    q, k, v = pl.pallas_call(
        _qkv_matmul_kernel,
        grid=grid,
        in_specs=[spec_x, spec_w, spec_w, spec_w],
        out_specs=(spec_o, spec_o, spec_o),
        out_shape=(jax.ShapeDtypeStruct((Mp, C), out_dtype),
                   jax.ShapeDtypeStruct((Mp, C), out_dtype),
                   jax.ShapeDtypeStruct((Mp, C), out_dtype)),
        compiler_params=pltpu.CompilerParams(
            dimension_semantics=("parallel",),
            vmem_limit_bytes=_VMEM_LIMIT_BYTES),
        cost_estimate=pl.CostEstimate(
            flops=2 * Mp * K * 3 * C,
            transcendentals=0,
            bytes_accessed=(Mp * K + 3 * K * C + 3 * Mp * C) * 2),
    )(x2d, wq, wk, wv)
    if Mp != M:
        q, k, v = q[:M], k[:M], v[:M]
    return q, k, v


def _linear_bias(x2d, w, b, out_dtype=jnp.float32):
    """y = x2d @ w + b with a VMEM-resident weight; f32 only for this final
    layer's writeback."""
    M, K = x2d.shape
    Nout = w.shape[1]
    tm = _row_tile(M)
    Mp = _round_up(M, tm)
    if Mp != M:
        x2d = jnp.pad(x2d, ((0, Mp - M), (0, 0)))
    grid = (Mp // tm,)
    b2d = b.reshape(1, Nout).astype(jnp.float32)

    y = pl.pallas_call(
        _linear_bias_kernel,
        grid=grid,
        in_specs=[pl.BlockSpec((tm, K), lambda i: (i, 0)),
                  pl.BlockSpec((K, Nout), lambda i: (0, 0)),   # resident weight
                  pl.BlockSpec((1, Nout), lambda i: (0, 0))],  # resident bias
        out_specs=pl.BlockSpec((tm, Nout), lambda i: (i, 0)),
        out_shape=jax.ShapeDtypeStruct((Mp, Nout), out_dtype),
        compiler_params=pltpu.CompilerParams(
            dimension_semantics=("parallel",),
            vmem_limit_bytes=_VMEM_LIMIT_BYTES),
        cost_estimate=pl.CostEstimate(
            flops=2 * Mp * K * Nout,
            transcendentals=0,
            bytes_accessed=(Mp * K + K * Nout) * 2 + (Mp + 1) * Nout * 4),
    )(x2d, w, b2d)
    if Mp != M:
        y = y[:M]
    return y


def _attention_core(q3, k3, v3, num_heads):
    """Per-(batch, q-tile) attention over all heads; output already in
    merged-head (B, N, C) layout.  K/V stay VMEM-resident across q tiles."""
    B, N, C = q3.shape
    Dh = C // num_heads
    tq = _divisor_tile(N, _TQ_PREF, 8)
    nq = N // tq

    qo_spec = pl.BlockSpec((1, tq, C), lambda b, i: (b, i, 0))
    kv_spec = pl.BlockSpec((1, N, C), lambda b, i: (b, 0, 0))   # ignore q tile

    return pl.pallas_call(
        partial(_attn_core_kernel, num_heads=num_heads, head_dim=Dh),
        grid=(B, nq),
        in_specs=[qo_spec, kv_spec, kv_spec],
        out_specs=qo_spec,
        out_shape=jax.ShapeDtypeStruct((B, N, C), jnp.bfloat16),
        scratch_shapes=[pltpu.VMEM((tq, C), jnp.float32)],
        compiler_params=pltpu.CompilerParams(
            dimension_semantics=("parallel", "arbitrary"),
            vmem_limit_bytes=_VMEM_LIMIT_BYTES),
        cost_estimate=pl.CostEstimate(
            flops=4 * B * num_heads * N * N * Dh,
            transcendentals=B * num_heads * N * N,
            bytes_accessed=4 * B * N * C * 2),
    )(q3, k3, v3)


def attention_forward(x, w_qkv, w_proj, b_proj, num_heads):
    """Pallas implementation of the ViT Attention.forward (eval semantics)."""
    B, N, C = x.shape
    assert C % num_heads == 0
    Dh = C // num_heads
    scale = Dh ** (-0.5)

    # One-time weight-sized prep (outside the kernels):
    #  * fold softmax scale AND log2(e) into W_q (exact:
    #    softmax(q k^T * scale) == exp2-normalize of (x@(Wq*scale*log2e)) k^T)
    #  * pre-cast weights and the activation to bf16 so every streamed block
    #    moves half the HBM bytes and the kernels do no per-tile casts.
    wq = (w_qkv[:, :C] * (scale * _LOG2E)).astype(jnp.bfloat16)
    wk = w_qkv[:, C:2 * C].astype(jnp.bfloat16)
    wv = w_qkv[:, 2 * C:].astype(jnp.bfloat16)
    wp = w_proj.astype(jnp.bfloat16)
    x2d = x.reshape(B * N, C).astype(jnp.bfloat16)

    # 1) fused qkv projection -> three (B*N, C) bf16 arrays, head h at columns
    #    [h*Dh, (h+1)*Dh) -- exactly the merged-head layout, no transposes.
    q2d, k2d, v2d = _qkv_projection(x2d, wq, wk, wv)
    q3 = q2d.reshape(B, N, C)          # free reshapes (no data movement)
    k3 = k2d.reshape(B, N, C)
    v3 = v2d.reshape(B, N, C)

    # 2) attention core (scale/log2e already folded into q via W_q)
    o3 = _attention_core(q3, k3, v3, num_heads)          # (B, N, C) bf16

    # 3) output projection + bias (f32 writeback for the module's final output)
    y2d = _linear_bias(o3.reshape(B * N, C), wp, b_proj, out_dtype=jnp.float32)
    # attn_drop / proj_drop are p=0.0 -> identity
    return y2d.reshape(B, N, C)


# ------------------------------ reference -----------------------------------

def attention_reference(x, w_qkv, w_proj, b_proj, num_heads):
    B, N, C = x.shape
    Dh = C // num_heads
    scale = Dh ** (-0.5)
    qkv = (x.reshape(B * N, C) @ w_qkv).reshape(B, N, 3, num_heads, Dh)
    qkv = qkv.transpose(2, 0, 3, 1, 4)
    q, k, v = qkv[0], qkv[1], qkv[2]
    attn = jnp.einsum("bhnd,bhmd->bhnm", q, k) * scale
    attn = jax.nn.softmax(attn, axis=-1)
    o = jnp.einsum("bhnm,bhmd->bhnd", attn, v)
    o = o.transpose(0, 2, 1, 3).reshape(B * N, C)
    return (o @ w_proj + b_proj).reshape(B, N, C)


# --------------------------------- main --------------------------------------

if __name__ == "__main__":
    B, N, C = 2, 8, 32
    num_heads = 4                      # head_dim = 8

    key = jax.random.PRNGKey(0)
    kx, kq, kp, kb = jax.random.split(key, 4)
    x = jax.random.normal(kx, (B, N, C), dtype=jnp.float32)
    w_qkv = jax.random.normal(kq, (C, 3 * C), dtype=jnp.float32) * 0.05
    w_proj = jax.random.normal(kp, (C, C), dtype=jnp.float32) * 0.05
    b_proj = jax.random.normal(kb, (C,), dtype=jnp.float32) * 0.05

    y = attention_forward(x, w_qkv, w_proj, b_proj, num_heads)
    y = jax.block_until_ready(y)

    y_ref = attention_reference(x, w_qkv, w_proj, b_proj, num_heads)
    assert y.shape == (B, N, C)
    # bf16 MXU inputs + approximate reciprocal -> looser tolerance than pure f32
    assert jnp.allclose(y, y_ref, atol=2e-2, rtol=2e-2), "mismatch vs reference"

    print("KERNEL_OK")
</pallas_src>

<mosaic_0001>
module attributes {stable_mosaic.version = 11 : i64} {
  func.func @_qkv_matmul_kernel(%arg0: i32, %arg1: memref<16x32xbf16, #tpu.memory_space<vmem>>, %arg2: memref<32x32xbf16, #tpu.memory_space<vmem>>, %arg3: memref<32x32xbf16, #tpu.memory_space<vmem>>, %arg4: memref<32x32xbf16, #tpu.memory_space<vmem>>, %arg5: memref<16x32xbf16, #tpu.memory_space<vmem>>, %arg6: memref<16x32xbf16, #tpu.memory_space<vmem>>, %arg7: memref<16x32xbf16, #tpu.memory_space<vmem>>) attributes {dimension_semantics = [#tpu.dimension_semantics<parallel>], iteration_bounds = array<i64: 1>, scalar_prefetch = 0 : i64, scratch_operands = 0 : i64, tpu.core_type = #tpu.core_type<tc>, window_params = [{transform_indices = @transform_0, window_bounds = array<i64: 16, 32>}, {pipeline_mode = #tpu.pipeline_mode<synchronous>, transform_indices = @transform_1, window_bounds = array<i64: 32, 32>}, {pipeline_mode = #tpu.pipeline_mode<synchronous>, transform_indices = @transform_2, window_bounds = array<i64: 32, 32>}, {pipeline_mode = #tpu.pipeline_mode<synchronous>, transform_indices = @transform_3, window_bounds = array<i64: 32, 32>}, {transform_indices = @transform_4, window_bounds = array<i64: 16, 32>}, {transform_indices = @transform_5, window_bounds = array<i64: 16, 32>}, {transform_indices = @transform_6, window_bounds = array<i64: 16, 32>}]} {
    %c0 = arith.constant 0 : index
    %c0_0 = arith.constant 0 : index
    %0 = vector.load %arg1[%c0, %c0_0] : memref<16x32xbf16, #tpu.memory_space<vmem>>, vector<16x32xbf16>
    %c0_1 = arith.constant 0 : index
    %c0_2 = arith.constant 0 : index
    %1 = vector.load %arg2[%c0_1, %c0_2] : memref<32x32xbf16, #tpu.memory_space<vmem>>, vector<32x32xbf16>
    %cst = arith.constant dense<0.000000e+00> : vector<16x32xf32>
    %2 = tpu.matmul %0, %1, %cst {dimension_numbers = #tpu.dot_dimension_numbers<[1], [0], [0], [1], [0, 0, 1, 1], [], []>} : vector<16x32xbf16>, vector<32x32xbf16>, vector<16x32xf32> -> vector<16x32xf32>
    %3 = arith.truncf %2 : vector<16x32xf32> to vector<16x32xbf16>
    %c0_3 = arith.constant 0 : index
    %c0_4 = arith.constant 0 : index
    %4 = vector.load %arg5[%c0_3, %c0_4] : memref<16x32xbf16, #tpu.memory_space<vmem>>, vector<16x32xbf16>
    tpu.vector_store %arg5[%c0_3, %c0_4], %3 {strides = array<i32>} : memref<16x32xbf16, #tpu.memory_space<vmem>>, vector<16x32xbf16>,
    %c0_5 = arith.constant 0 : index
    %c0_6 = arith.constant 0 : index
    %5 = vector.load %arg3[%c0_5, %c0_6] : memref<32x32xbf16, #tpu.memory_space<vmem>>, vector<32x32xbf16>
    %cst_7 = arith.constant dense<0.000000e+00> : vector<16x32xf32>
    %6 = tpu.matmul %0, %5, %cst_7 {dimension_numbers = #tpu.dot_dimension_numbers<[1], [0], [0], [1], [0, 0, 1, 1], [], []>} : vector<16x32xbf16>, vector<32x32xbf16>, vector<16x32xf32> -> vector<16x32xf32>
    %7 = arith.truncf %6 : vector<16x32xf32> to vector<16x32xbf16>
    %c0_8 = arith.constant 0 : index
    %c0_9 = arith.constant 0 : index
    %8 = vector.load %arg6[%c0_8, %c0_9] : memref<16x32xbf16, #tpu.memory_space<vmem>>, vector<16x32xbf16>
    tpu.vector_store %arg6[%c0_8, %c0_9], %7 {strides = array<i32>} : memref<16x32xbf16, #tpu.memory_space<vmem>>, vector<16x32xbf16>,
    %c0_10 = arith.constant 0 : index
    %c0_11 = arith.constant 0 : index
    %9 = vector.load %arg4[%c0_10, %c0_11] : memref<32x32xbf16, #tpu.memory_space<vmem>>, vector<32x32xbf16>
    %cst_12 = arith.constant dense<0.000000e+00> : vector<16x32xf32>
    %10 = tpu.matmul %0, %9, %cst_12 {dimension_numbers = #tpu.dot_dimension_numbers<[1], [0], [0], [1], [0, 0, 1, 1], [], []>} : vector<16x32xbf16>, vector<32x32xbf16>, vector<16x32xf32> -> vector<16x32xf32>
    %11 = arith.truncf %10 : vector<16x32xf32> to vector<16x32xbf16>
    %c0_13 = arith.constant 0 : index
    %c0_14 = arith.constant 0 : index
    %12 = vector.load %arg7[%c0_13, %c0_14] : memref<16x32xbf16, #tpu.memory_space<vmem>>, vector<16x32xbf16>
    tpu.vector_store %arg7[%c0_13, %c0_14], %11 {strides = array<i32>} : memref<16x32xbf16, #tpu.memory_space<vmem>>, vector<16x32xbf16>,
    return
  }
  func.func @transform_0(%arg0: i32) -> (i32, i32) {
    %c0_i32 = arith.constant 0 : i32
    %c0_i32_0 = arith.constant 0 : i32
    return %arg0, %c0_i32 : i32, i32
  }
  func.func @transform_1(%arg0: i32) -> (i32, i32) {
    %c0_i32 = arith.constant 0 : i32
    %c0_i32_0 = arith.constant 0 : i32
    %c0_i32_1 = arith.constant 0 : i32
    return %c0_i32, %c0_i32_0 : i32, i32
  }
  func.func @transform_2(%arg0: i32) -> (i32, i32) {
    %c0_i32 = arith.constant 0 : i32
    %c0_i32_0 = arith.constant 0 : i32
    %c0_i32_1 = arith.constant 0 : i32
    return %c0_i32, %c0_i32_0 : i32, i32
  }
  func.func @transform_3(%arg0: i32) -> (i32, i32) {
    %c0_i32 = arith.constant 0 : i32
    %c0_i32_0 = arith.constant 0 : i32
    %c0_i32_1 = arith.constant 0 : i32
    return %c0_i32, %c0_i32_0 : i32, i32
  }
  func.func @transform_4(%arg0: i32) -> (i32, i32) {
    %c0_i32 = arith.constant 0 : i32
    %c0_i32_0 = arith.constant 0 : i32
    return %arg0, %c0_i32 : i32, i32
  }
  func.func @transform_5(%arg0: i32) -> (i32, i32) {
    %c0_i32 = arith.constant 0 : i32
    %c0_i32_0 = arith.constant 0 : i32
    return %arg0, %c0_i32 : i32, i32
  }
  func.func @transform_6(%arg0: i32) -> (i32, i32) {
    %c0_i32 = arith.constant 0 : i32
    %c0_i32_0 = arith.constant 0 : i32
    return %arg0, %c0_i32 : i32, i32
  }
}

</mosaic_0001>

<bundles_post_ra>
// kernel: tpu_custom_call.1
= control target key start
LH: loop header
LB: loop body
LE: loop exit
PB: predicated region body
PF: predicated region fallthrough
CT: control target
= control target key end

     0   :  { %12 = vsyncpa [#allocation3], 0  ;;  %s573_s0 = inlined_call_operand.hbm [shape: bf16[16,32], index: 0, kind: input, shape index: {}]   ;;  %s574_s1 = inlined_call_operand.hbm [shape: bf16[32,32], index: 1, kind: input, shape index: {}]   ;;  %s575_s2 = inlined_call_operand.hbm [shape: bf16[32,32], index: 2, kind: input, shape index: {}]   ;;  %s576_s3 = inlined_call_operand.hbm [shape: bf16[32,32], index: 3, kind: input, shape index: {}]   ;;  %s577_s4 = inlined_call_operand.hbm [shape: bf16[16,32], index: 4, kind: output, shape index: {0}]   ;;  %s578_s5 = inlined_call_operand.hbm [shape: bf16[16,32], index: 5, kind: output, shape index: {1}]   ;;  %s579_s6 = inlined_call_operand.hbm [shape: bf16[16,32], index: 6, kind: output, shape index: {2}]  }
   0x1   :  { %13 = vsyncpa [#allocation6], 0 }
   0x2   :  { %14 = vsyncpa [#allocation9], 0 }
   0x3   :  { %15 = vsyncpa [#allocation4], 0 }
   0x4   :  { %16 = vsyncpa [#allocation12], 0  ;;  %s34_s23 = sshll.u32 %s574_s1, 4  ;;  %s481_s24 = smov [#allocation5]   ;;  %s35_s23 = int_to_ptr.hbm [resolvable:$true] %s34_s23 }
   0x5   :  { %s36_s25 = sshll.u32 %s481_s24, 4  ;;  %s21_s28 = sshll.u32 %s573_s0, 4  ;;  %s37_s25 = int_to_ptr.vmem [resolvable:$true] %s36_s25  ;;  %s22_s28 = int_to_ptr.hbm [resolvable:$true] %s21_s28 }
   0x6   :  { %s482_s29 = smov 64   ;;  %s483_s30 = smov 4  }
   0x7   :  { %42 = dma.hbm_to_vmem [thread:$0]  %s35_s23, 256, %s37_s25, [#allocation6], %s482_s29, %s482_s29, %s483_s30  }
   0x8   :  { %s484_s7 = smov [#allocation2]   ;;  %s47_s1 = sshll.u32 %s575_s2, 4  ;;  %s48_s1 = int_to_ptr.hbm [resolvable:$true] %s47_s1 }
   0x9   :  { %s23_s8 = sshll.u32 %s484_s7, 4  ;;  %s60_s12 = sshll.u32 %s576_s3, 4  ;;  %s24_s8 = int_to_ptr.vmem [resolvable:$true] %s23_s8  ;;  %s61_s12 = int_to_ptr.hbm [resolvable:$true] %s60_s12 }
   0xa   :  { %29 = dma.hbm_to_vmem [thread:$0]  %s22_s28, 128, %s24_s8, [#allocation3], %s482_s29, %s482_s29, %s483_s30  }
   0xb   :  { %s485_s13 = smov [#allocation7]   ;;  %s486_s15 = smov [#allocation8]  }
   0xc   :  { %s49_s14 = sshll.u32 %s485_s13, 4  ;;  %s62_s2 = sshll.u32 %s486_s15, 4  ;;  %s50_s14 = int_to_ptr.vmem [resolvable:$true] %s49_s14  ;;  %s63_s2 = int_to_ptr.vmem [resolvable:$true] %s62_s2 }
   0xd   :  { %55 = dma.hbm_to_vmem [thread:$0]  %s48_s1, 256, %s50_s14, [#allocation6], %s482_s29, %s482_s29, %s483_s30  }
   0xe   :  { %68 = dma.hbm_to_vmem [thread:$0]  %s61_s12, 256, %s63_s2, [#allocation9], %s482_s29, %s482_s29, %s483_s30  }
   0xf   :  { %471 = dma.done.wait [#allocation3], 128  }
  0x10   :  { %472 = vsyncadd [#allocation3], 4294967168 }
  0x11   :  { %473 = dma.done.wait [#allocation6], 512  }
  0x12   :  { %474 = vsyncadd [#allocation6], 4294966784 }
  0x13   :  { %475 = dma.done.wait [#allocation9], 256  }
  0x14   :  { %476 = vsyncadd [#allocation9], 4294967040  ;;  %v289_v0 = vld [vmem:[#allocation5 + $0x8] sm:$0xff]  ;;  %v291_v1 = vld [vmem:[#allocation7 + $0x8] sm:$0xff]  ;;  %vm109_vm0 = vcmask 261120   ;;  %vm129_vm1 = vcmask 257024  }
  0x15   :  { %v293_v2 = vld [vmem:[#allocation8 + $0x8] sm:$0xff]  ;;  %119 = vmatpush.bf16.msra.mxu0 %v289_v0  ;;  %154 = vmatpush.bf16.msra.mxu1 %v291_v1  ;;  %v288_v3 = vld [vmem:[#allocation5] sm:$0xff]  ;;  %v290_v4 = vld [vmem:[#allocation7] sm:$0xff]  ;;  %s487_s3 = smov [#allocation10]   ;;  %s206_s19 = sshll.u32 %s577_s4, 4  ;;  %s207_s19 = int_to_ptr.hbm [resolvable:$true] %s206_s19 }
  0x16   :  { %188 = vmatpush.bf16.msra.mxu2 %v293_v2  ;;  %v292_v5 = vld [vmem:[#allocation8] sm:$0xff]  ;;  %v287_v6 = vld [vmem:[#allocation2] sm:$0xff]  ;;  %s204_s16 = sshll.u32 %s487_s3, 4  ;;  %s488_s20 = smov [#allocation11]   ;;  %s205_s16 = int_to_ptr.vmem [resolvable:$true] %s204_s16 }
  0x17   :  { %s217_s21 = sshll.u32 %s488_s20, 4  ;;  %s219_s24 = sshll.u32 %s578_s5, 4  ;;  %s218_s21 = int_to_ptr.vmem [resolvable:$true] %s217_s21  ;;  %s220_s24 = int_to_ptr.hbm [resolvable:$true] %s219_s24 }
  0x18   :  { %s489_s4 = smov [#allocation13]   ;;  %s232_s28 = sshll.u32 %s579_s6, 4  ;;  %s233_s28 = int_to_ptr.hbm [resolvable:$true] %s232_s28 }
  0x19   :  { %120 = vmatpush.bf16.msra.mxu0 %v288_v3  ;;  %155 = vmatpush.bf16.msra.mxu1 %v290_v4  ;;  %s230_s25 = sshll.u32 %s489_s4, 4  ;;  %s231_s25 = int_to_ptr.vmem [resolvable:$true] %s230_s25 }
  0x1a   :  { %189 = vmatpush.bf16.msra.mxu2 %v292_v5 }
  0x1c   :  { %268 = vmatmul.msk.bf16.vlgmr.msra.gmra.mxu0 %vm109_vm0, %v287_v6  ;;  %277 = vmatmul.msk.bf16.vlgmr.msra.gmra.mxu1 %vm109_vm0, %v287_v6 }
  0x1d   :  { %286 = vmatmul.msk.bf16.vlgmr.msra.gmra.mxu2 %vm109_vm0, %v287_v6 }
  0x99   :  { %v122_v7 = vpop.f32.mrf.mxu0  ;;  %v157_v8 = vpop.f32.mrf.mxu1 }
  0x9a   :  { %v127_v9 = vpack.c.bf16 %v122_v7, %v122_v7  ;;  %v162_v10 = vpack.c.bf16 %v157_v8, %v157_v8 }
  0x9c   :  { %130 = vst.msk [vmem:[#allocation10] sm:$0xf] %vm129_vm1, %v127_v9 }
  0x9d   :  { %164 = vst.msk [vmem:[#allocation11] sm:$0xf] %vm129_vm1, %v162_v10 }
  0xa0   :  { %v191_v11 = vpop.f32.mrf.mxu2 }
  0xa1   :  { %v196_v12 = vpack.c.bf16 %v191_v11, %v191_v11  ;;  %v124_v13 = vpop.f32.mrf.mxu0  ;;  %v159_v14 = vpop.f32.mrf.mxu1 }
  0xa2   :  { %v128_v15 = vpack.c.bf16 %v124_v13, %v124_v13  ;;  %v163_v16 = vpack.c.bf16 %v159_v14, %v159_v14 }
  0xa3   :  { %198 = vst.msk [vmem:[#allocation13] sm:$0xf] %vm129_vm1, %v196_v12 }
  0xa4   :  { %131 = vst.msk [vmem:[#allocation10 + $0x4] sm:$0xf] %vm129_vm1, %v128_v15 }
  0xa5   :  { %165 = vst.msk [vmem:[#allocation11 + $0x4] sm:$0xf] %vm129_vm1, %v163_v16  ;;  %212 = dma.vmem_to_hbm [thread:$0]  %s205_s16, 128, %s207_s19, [#allocation4], %s482_s29, %s482_s29, %s483_s30  }
  0xa6   :  { %225 = dma.vmem_to_hbm [thread:$0]  %s218_s21, 128, %s220_s24, [#allocation12], %s482_s29, %s482_s29, %s483_s30  }
  0xa8   :  { %v193_v17 = vpop.f32.mrf.mxu2 }
  0xa9   :  { %v197_v18 = vpack.c.bf16 %v193_v17, %v193_v17 }
  0xab   :  { %199 = vst.msk [vmem:[#allocation13 + $0x4] sm:$0xf] %vm129_vm1, %v197_v18 }
  0xac   :  { %238 = dma.vmem_to_hbm [thread:$0]  %s231_s25, 128, %s233_s28, [#allocation12], %s482_s29, %s482_s29, %s483_s30  }
  0xad   :  { %477 = dma.done.wait [#allocation4], 128  }
  0xae   :  { %478 = vsyncadd [#allocation4], 4294967168 }
  0xaf   :  { %479 = dma.done.wait [#allocation12], 256  }
  0xb0   :  { %480 = vsyncadd [#allocation12], 4294967040 }
  0xb1   :  { %251 = vsyncpa [#allocation3], 1 }
  0xb2   :  { %252 = vsyncpa [#allocation6], 1 }
  0xb3   :  { %253 = vsyncpa [#allocation9], 1 }
  0xb4   :  { %254 = vsyncpa [#allocation4], 1 }
  0xb5   :  { %255 = vsyncpa [#allocation12], 1 }

</bundles_post_ra>
